<compile_context>
chip_gen: v7x
topology: tpu7x:2x2x1
jax: 0.10.0
libtpu: 0.0.40
codegen_flags: <defaults>
</compile_context>

<pallas_src>
import functools

import jax
import jax.numpy as jnp
from jax.experimental import pallas as pl
from jax.experimental.pallas import tpu as pltpu


def _round_up(x, m):
    return ((x + m - 1) // m) * m


def _pick_row_tile(m):
    for t in (512, 256, 128, 64, 32, 16, 8):
        if m % t == 0:
            return t
    return 8


def _detect_vmem_limit():
    """Generation-aware VMEM budget: ~96 MiB on v5e/v6e (128 MiB), 48 MiB on v7x (64 MiB)."""
    try:
        cap = int(pltpu.get_tpu_info().vmem_capacity_bytes)
    except Exception:
        cap = 64 * 1024 * 1024
    return max(32 * 1024 * 1024, min(cap * 3 // 4, 100 * 1024 * 1024))


_VMEM_LIMIT = _detect_vmem_limit()
_BIG_VMEM = _VMEM_LIMIT >= 80 * 1024 * 1024   # True on v5e/v6e, False on v7x


# ------------------------------------------------------------------
# Pallas kernels
# ------------------------------------------------------------------

def _mm_kernel(*refs, relu, has_res):
    """o = opt_relu((a @ b) + bias [+ residual]); K-reduction over grid axis 2."""
    if has_res:
        a_ref, b_ref, c_ref, r_ref, o_ref, acc_ref = refs
    else:
        a_ref, b_ref, c_ref, o_ref, acc_ref = refs
        r_ref = None

    @pl.when(pl.program_id(2) == 0)
    def _():
        acc_ref[...] = jnp.zeros_like(acc_ref)

    acc_ref[...] += jnp.dot(a_ref[...], b_ref[...],
                            preferred_element_type=jnp.float32)

    @pl.when(pl.program_id(2) == pl.num_programs(2) - 1)
    def _():
        y = acc_ref[...] + c_ref[...]
        if has_res:
            y = y + r_ref[...].astype(jnp.float32)
        if relu:
            y = jnp.maximum(y, 0.0)
        o_ref[...] = y.astype(o_ref.dtype)


def _conv3x3_kernel(x_ref, w_ref, b_ref, o_ref, *, H, W, Wp8, Cin, relu):
    """3x3 / stride 1 / pad 1 conv for one image, fused bias + ReLU.

    x_ref: (1, Hp*Wp8, Cin) bf16, zero-padded plane (W padded up to Wp8, mult. of 8)
    w_ref: (9*Cin, Cout)    bf16, BN scale folded in, tap-major rows
    b_ref: (1, Cout)        f32
    o_ref: (1, H, W, Cout)

    Instead of materializing an im2col patch matrix, issue 9 accumulated MXU dots
    on shifted views of the flattened padded plane (wrap-around reads land only in
    garbage columns that get cropped, since Wp8 >= W + 2).
    """
    m = H * Wp8
    cout = o_ref.shape[-1]
    acc = jnp.zeros((m, cout), jnp.float32)
    for t in range(9):
        off = (t // 3) * Wp8 + (t % 3)
        acc = acc + jnp.dot(x_ref[0, off:off + m, :],
                            w_ref[t * Cin:(t + 1) * Cin, :],
                            preferred_element_type=jnp.float32)
    y = acc + b_ref[...]
    if relu:
        y = jnp.maximum(y, 0.0)
    # cast to bf16 BEFORE the (non-view) crop copy to halve the VMEM temp
    y = y.astype(o_ref.dtype).reshape(H, Wp8, cout)[:, :W, :]
    o_ref[0] = y


def _conv1x1_s2_kernel(x_ref, w_ref, b_ref, o_ref, *, Ho, Wo, C, relu):
    """1x1 / stride 2 conv for one image; subsample folded into the kernel.

    x_ref: (1, Ho, 1, Wo, 2C) bf16 -- even input rows selected by the BlockSpec
           (block index 0 along the size-2 row-pair axis); even input columns are
           the first C lanes of the interleaved last dim.
    """
    xv = x_ref[0, :, 0]                      # (Ho, Wo, 2C)
    a = xv[:, :, :C].reshape(Ho * Wo, C)     # even columns
    y = jnp.dot(a, w_ref[...], preferred_element_type=jnp.float32) + b_ref[...]
    if relu:
        y = jnp.maximum(y, 0.0)
    o_ref[0] = y.astype(o_ref.dtype).reshape(Ho, Wo, -1)


def _maxpool_kernel(x_ref, o_ref, *, Ho, Wo, C):
    """MaxPool 3x3 stride 2 pad 1 for one image, via even/odd row & column taps."""
    r_e = x_ref[0, :, 0]          # even padded rows: (Hp/2, Wo+1, 2C)
    r_o = x_ref[0, :, 1]          # odd padded rows

    def col3(r):
        return jnp.maximum(jnp.maximum(r[:, :Wo, :C], r[:, :Wo, C:]),
                           r[:, 1:Wo + 1, :C])

    cm_e = col3(r_e)
    cm_o = col3(r_o)
    out = jnp.maximum(jnp.maximum(cm_e[:Ho], cm_o[:Ho]), cm_e[1:Ho + 1])
    o_ref[0] = out.astype(o_ref.dtype)


def _max9_kernel(x_ref, o_ref):
    o_ref[...] = jnp.max(x_ref[...], axis=1)


def _avgpool_kernel(x_ref, o_ref):
    o_ref[...] = jnp.mean(x_ref[...].astype(jnp.float32), axis=1, keepdims=True)


def _head_kernel(x_ref, w1_ref, b1_ref, w2_ref, b2_ref, w3_ref, b3_ref, o_ref,
                 *, n_cls):
    """Fused MLP head: fc1+ReLU -> fc2+ReLU -> fc3 -> log_softmax (Dropout = identity)."""
    h = jnp.dot(x_ref[...], w1_ref[...], preferred_element_type=jnp.float32) + b1_ref[...]
    h = jnp.maximum(h, 0.0).astype(jnp.bfloat16)
    h = jnp.dot(h, w2_ref[...], preferred_element_type=jnp.float32) + b2_ref[...]
    h = jnp.maximum(h, 0.0).astype(jnp.bfloat16)
    z = jnp.dot(h, w3_ref[...], preferred_element_type=jnp.float32) + b3_ref[...]
    col = jax.lax.broadcasted_iota(jnp.int32, z.shape, 1)
    z = jnp.where(col < n_cls, z, -1e30)     # mask lane-padding columns
    m = jnp.max(z, axis=-1, keepdims=True)
    lse = jnp.log(jnp.sum(jnp.exp(z - m), axis=-1, keepdims=True)) + m
    o_ref[...] = (z - lse).astype(o_ref.dtype)


# ------------------------------------------------------------------
# Tiled matmul wrapper (bf16 MXU, f32 accumulate, fused bias/res/relu)
# ------------------------------------------------------------------

def matmul_bias(a, b, bias, *, relu=False, residual=None, out_dtype=jnp.bfloat16):
    M, K = a.shape
    K2, N = b.shape
    assert K == K2

    # ---- tile selection: lane-aligned K, shape-adaptive, bigger tiles on big VMEM ----
    if M >= 128:
        Mp = _round_up(M, 128)
        tm = next(t for t in ((512, 256, 128) if _BIG_VMEM else (256, 128))
                  if Mp % t == 0)
    else:
        Mp = _round_up(M, 8)
        tm = Mp

    Kp = _round_up(K, 128)                       # always pad K to a lane multiple
    tk = next(t for t in (512, 256, 128) if Kp % t == 0)

    Np = _round_up(N, 128)
    tn = next(t for t in ((512, 256, 128) if _BIG_VMEM else (256, 128))
              if Np % t == 0)

    a_p = a.astype(jnp.bfloat16)
    if (Mp, Kp) != (M, K):
        a_p = jnp.pad(a_p, ((0, Mp - M), (0, Kp - K)))
    b_p = b.astype(jnp.bfloat16)
    if (Kp, Np) != (K, N):
        b_p = jnp.pad(b_p, ((0, Kp - K), (0, Np - N)))
    c_p = bias.reshape(1, N).astype(jnp.float32)
    if Np != N:
        c_p = jnp.pad(c_p, ((0, 0), (0, Np - N)))

    inputs = [a_p, b_p, c_p]
    in_specs = [
        pl.BlockSpec((tm, tk), lambda i, j, k: (i, k)),
        pl.BlockSpec((tk, tn), lambda i, j, k: (k, j)),
        pl.BlockSpec((1, tn), lambda i, j, k: (0, j)),
    ]
    has_res = residual is not None
    bytes_accessed = a_p.size * 2 + b_p.size * 2 + Mp * Np * jnp.dtype(out_dtype).itemsize
    if has_res:
        r_p = residual.astype(jnp.bfloat16)
        if (Mp, Np) != (M, N):
            r_p = jnp.pad(r_p, ((0, Mp - M), (0, Np - N)))
        inputs.append(r_p)
        in_specs.append(pl.BlockSpec((tm, tn), lambda i, j, k: (i, j)))
        bytes_accessed += r_p.size * 2

    out = pl.pallas_call(
        functools.partial(_mm_kernel, relu=relu, has_res=has_res),
        out_shape=jax.ShapeDtypeStruct((Mp, Np), out_dtype),
        grid_spec=pltpu.PrefetchScalarGridSpec(
            num_scalar_prefetch=0,
            grid=(Mp // tm, Np // tn, Kp // tk),
            in_specs=in_specs,
            out_specs=pl.BlockSpec((tm, tn), lambda i, j, k: (i, j)),
            scratch_shapes=[pltpu.VMEM((tm, tn), jnp.float32)],
        ),
        compiler_params=pltpu.CompilerParams(
            dimension_semantics=("parallel", "parallel", "arbitrary"),
            vmem_limit_bytes=_VMEM_LIMIT),
        cost_estimate=pl.CostEstimate(flops=2 * Mp * Np * Kp,
                                      transcendentals=0,
                                      bytes_accessed=bytes_accessed),
    )(*inputs)
    if (Mp, Np) != (M, N):
        out = out[:M, :N]
    return out


# ------------------------------------------------------------------
# Convolutions
# ------------------------------------------------------------------

def conv3x3_s1(x, w, bias, *, relu=True):
    """3x3 / stride 1 / pad 1 conv, tap-accumulated MXU kernel (no im2col anywhere)."""
    n, h, wd, cin = x.shape
    cout = w.shape[-1]
    wp8 = _round_up(wd + 2, 8)
    hp = h + 3                                    # 1 top + 2 bottom halo rows
    xp = jnp.pad(x.astype(jnp.bfloat16),
                 ((0, 0), (1, hp - h - 1), (1, wp8 - wd - 1), (0, 0)))
    x_flat = xp.reshape(n, hp * wp8, cin)
    wm = w.reshape(9 * cin, cout).astype(jnp.bfloat16)
    b2 = bias.reshape(1, cout).astype(jnp.float32)
    m = h * wp8

    return pl.pallas_call(
        functools.partial(_conv3x3_kernel, H=h, W=wd, Wp8=wp8, Cin=cin, relu=relu),
        out_shape=jax.ShapeDtypeStruct((n, h, wd, cout), jnp.bfloat16),
        grid_spec=pltpu.PrefetchScalarGridSpec(
            num_scalar_prefetch=0,
            grid=(n,),
            in_specs=[
                pl.BlockSpec((1, hp * wp8, cin), lambda i: (i, 0, 0)),
                pl.BlockSpec((9 * cin, cout), lambda i: (0, 0)),
                pl.BlockSpec((1, cout), lambda i: (0, 0)),
            ],
            out_specs=pl.BlockSpec((1, h, wd, cout), lambda i: (i, 0, 0, 0)),
        ),
        compiler_params=pltpu.CompilerParams(
            dimension_semantics=("parallel",),
            vmem_limit_bytes=_VMEM_LIMIT),
        cost_estimate=pl.CostEstimate(
            flops=2 * n * m * 9 * cin * cout,
            transcendentals=0,
            bytes_accessed=x_flat.size * 2 + wm.size * 2 + n * h * wd * cout * 2),
    )(x_flat, wm, b2)


def conv1x1_s2(x, w, bias, *, relu=False):
    """1x1 / stride 2 conv with the subsample folded into the kernel's DMA pattern."""
    n, h, wd, cin = x.shape
    cout = w.shape[-1]
    ho, wo = h // 2, wd // 2
    x5 = x.astype(jnp.bfloat16).reshape(n, ho, 2, wo, 2 * cin)   # free metadata reshape
    wm = w.reshape(cin, cout).astype(jnp.bfloat16)
    b2 = bias.reshape(1, cout).astype(jnp.float32)

    return pl.pallas_call(
        functools.partial(_conv1x1_s2_kernel, Ho=ho, Wo=wo, C=cin, relu=relu),
        out_shape=jax.ShapeDtypeStruct((n, ho, wo, cout), jnp.bfloat16),
        grid_spec=pltpu.PrefetchScalarGridSpec(
            num_scalar_prefetch=0,
            grid=(n,),
            in_specs=[
                pl.BlockSpec((1, ho, 1, wo, 2 * cin), lambda i: (i, 0, 0, 0, 0)),
                pl.BlockSpec((cin, cout), lambda i: (0, 0)),
                pl.BlockSpec((1, cout), lambda i: (0, 0)),
            ],
            out_specs=pl.BlockSpec((1, ho, wo, cout), lambda i: (i, 0, 0, 0)),
        ),
        compiler_params=pltpu.CompilerParams(
            dimension_semantics=("parallel",),
            vmem_limit_bytes=_VMEM_LIMIT),
        cost_estimate=pl.CostEstimate(
            flops=2 * n * ho * wo * cin * cout,
            transcendentals=0,
            bytes_accessed=n * ho * wo * 2 * cin * 2 + wm.size * 2
                           + n * ho * wo * cout * 2),
    )(x5, wm, b2)


def conv1x1(x, w, bias, *, stride=1, relu=True, residual=None):
    """1x1 conv fast path: no im2col, direct (N*H*W, Cin) matmul."""
    if stride != 1:
        x = x[:, ::stride, ::stride, :]
    n, h, wd, cin = x.shape
    cout = w.shape[-1]
    a = x.reshape(n * h * wd, cin)
    res = residual.reshape(n * h * wd, cout) if residual is not None else None
    out = matmul_bias(a, w.reshape(cin, cout), bias, relu=relu, residual=res)
    return out.reshape(n, h, wd, cout)


def im2col(x, kh, kw, stride, pad):
    """x: NHWC (bf16) -> patches (N*OH*OW, KH*KW*C) [plain-JAX glue, bf16]."""
    n, h, w, c = x.shape
    xp = jnp.pad(x, ((0, 0), (pad, pad), (pad, pad), (0, 0)))
    oh = (h + 2 * pad - kh) // stride + 1
    ow = (w + 2 * pad - kw) // stride + 1
    cols = [xp[:, i:i + stride * oh:stride, j:j + stride * ow:stride, :]
            for i in range(kh) for j in range(kw)]
    patches = jnp.concatenate(cols, axis=-1).reshape(n * oh * ow, kh * kw * c)
    return patches, n, oh, ow


def conv_im2col(x, w, bias, *, stride, pad, relu, residual=None):
    """Fallback conv path (7x7 stem, strided/small-W 3x3): bf16 im2col + tiled matmul."""
    kh, kw, cin, cout = w.shape
    patches, n, oh, ow = im2col(x.astype(jnp.bfloat16), kh, kw, stride, pad)
    res = residual.reshape(n * oh * ow, cout) if residual is not None else None
    out = matmul_bias(patches, w.reshape(kh * kw * cin, cout), bias,
                      relu=relu, residual=res)
    return out.reshape(n, oh, ow, cout)


def conv_bn(x, w, bias, *, stride, pad, relu=True, residual=None):
    """Conv with folded inference-BN, optional fused residual add + ReLU (static dispatch)."""
    kh, kw, cin, cout = w.shape
    n, h, wd, _ = x.shape
    if kh == 1 and kw == 1 and pad == 0:
        if (stride == 2 and residual is None
                and h % 2 == 0 and wd % 2 == 0
                and ((h // 2) * (wd // 2)) % 8 == 0
                and cin % 128 == 0):
            return conv1x1_s2(x, w, bias, relu=relu)
        return conv1x1(x, w, bias, stride=stride, relu=relu, residual=residual)
    if (kh == 3 and kw == 3 and stride == 1 and pad == 1
            and residual is None and wd > 16):
        # wide planes: fused tap-accumulating kernel (Wp8 padding waste is small)
        return conv3x3_s1(x, w, bias, relu=relu)
    return conv_im2col(x, w, bias, stride=stride, pad=pad, relu=relu,
                       residual=residual)


# ------------------------------------------------------------------
# Pooling
# ------------------------------------------------------------------

def _maxpool_fallback(x):
    n, h, w, c = x.shape
    ho = (h - 1) // 2 + 1
    wo = (w - 1) // 2 + 1
    xp = jnp.pad(x, ((0, 0), (1, 1), (1, 1), (0, 0)), constant_values=-1e30)
    taps = [xp[:, di:di + 2 * ho:2, dj:dj + 2 * wo:2, :]
            for di in range(3) for dj in range(3)]
    pat = jnp.stack(taps, axis=3).reshape(n * ho * wo, 9, c)
    m = n * ho * wo
    mp = _round_up(m, 8)
    if mp != m:
        pat = jnp.pad(pat, ((0, mp - m), (0, 0), (0, 0)), constant_values=-1e30)
    tm = _pick_row_tile(mp)
    out = pl.pallas_call(
        _max9_kernel,
        out_shape=jax.ShapeDtypeStruct((mp, c), x.dtype),
        grid_spec=pltpu.PrefetchScalarGridSpec(
            num_scalar_prefetch=0, grid=(mp // tm,),
            in_specs=[pl.BlockSpec((tm, 9, c), lambda i: (i, 0, 0))],
            out_specs=pl.BlockSpec((tm, c), lambda i: (i, 0)),
        ),
        compiler_params=pltpu.CompilerParams(dimension_semantics=("parallel",)),
    )(pat)
    return out[:m].reshape(n, ho, wo, c)


def maxpool_3x3_s2(x):
    """MaxPool2d(kernel=3, stride=2, pad=1), one image per grid step."""
    n, h, w, c = x.shape
    if h % 2 or w % 2:
        return _maxpool_fallback(x)
    ho, wo = h // 2, w // 2
    xp = jnp.pad(x, ((0, 0), (1, 1), (1, 1), (0, 0)), constant_values=-1e30)
    hp, wp = h + 2, w + 2
    x5 = xp.reshape(n, hp // 2, 2, wp // 2, 2 * c)        # free metadata reshape
    return pl.pallas_call(
        functools.partial(_maxpool_kernel, Ho=ho, Wo=wo, C=c),
        out_shape=jax.ShapeDtypeStruct((n, ho, wo, c), x.dtype),
        grid_spec=pltpu.PrefetchScalarGridSpec(
            num_scalar_prefetch=0, grid=(n,),
            in_specs=[pl.BlockSpec((1, hp // 2, 2, wp // 2, 2 * c),
                                   lambda i: (i, 0, 0, 0, 0))],
            out_specs=pl.BlockSpec((1, ho, wo, c), lambda i: (i, 0, 0, 0)),
        ),
        compiler_params=pltpu.CompilerParams(
            dimension_semantics=("parallel",),
            vmem_limit_bytes=_VMEM_LIMIT),
    )(x5)


def global_avgpool(x):
    """AdaptiveAvgPool2d(1) -> (N, C) f32, one image per grid step."""
    n, h, w, c = x.shape
    x3 = x.reshape(n, h * w, c)
    out = pl.pallas_call(
        _avgpool_kernel,
        out_shape=jax.ShapeDtypeStruct((n, 1, c), jnp.float32),
        grid_spec=pltpu.PrefetchScalarGridSpec(
            num_scalar_prefetch=0, grid=(n,),
            in_specs=[pl.BlockSpec((1, h * w, c), lambda i: (i, 0, 0))],
            out_specs=pl.BlockSpec((1, 1, c), lambda i: (i, 0, 0)),
        ),
        compiler_params=pltpu.CompilerParams(dimension_semantics=("parallel",)),
    )(x3)
    return out.reshape(n, c)


# ------------------------------------------------------------------
# Fused MLP head (single pallas_call, weights resident in VMEM)
# ------------------------------------------------------------------

def mlp_head(x, fc1, fc2, fc3, *, n_cls=2):
    w1, b1 = fc1
    w2, b2 = fc2
    w3, b3 = fc3
    M = x.shape[0]
    Mp = _round_up(M, 8)
    xp = x.astype(jnp.bfloat16)
    if Mp != M:
        xp = jnp.pad(xp, ((0, Mp - M), (0, 0)))
    Np = _round_up(n_cls, 128)
    w3p = jnp.pad(w3.astype(jnp.bfloat16), ((0, 0), (0, Np - n_cls)))
    b3p = jnp.pad(b3.reshape(1, -1).astype(jnp.float32), ((0, 0), (0, Np - n_cls)))

    out = pl.pallas_call(
        functools.partial(_head_kernel, n_cls=n_cls),
        out_shape=jax.ShapeDtypeStruct((Mp, Np), jnp.float32),
        compiler_params=pltpu.CompilerParams(vmem_limit_bytes=_VMEM_LIMIT),
    )(xp,
      w1.astype(jnp.bfloat16), b1.reshape(1, -1).astype(jnp.float32),
      w2.astype(jnp.bfloat16), b2.reshape(1, -1).astype(jnp.float32),
      w3p, b3p)
    return out[:M, :n_cls]


# ------------------------------------------------------------------
# Deterministic parameter initialization (synthetic -- no checkpoint load)
# ------------------------------------------------------------------

class ParamGen:
    def __init__(self, seed=0):
        self._key = jax.random.PRNGKey(seed)
        self._i = 0

    def normal(self, shape, std):
        self._i += 1
        k = jax.random.fold_in(self._key, self._i)
        return std * jax.random.normal(k, shape, jnp.float32)


def conv_bn_params(pg, k, cin, cout):
    fan_in = k * k * cin
    w = pg.normal((k, k, cin, cout), (2.0 / fan_in) ** 0.5)
    gamma = 1.0 + pg.normal((cout,), 0.05)
    beta = pg.normal((cout,), 0.05)
    mean = pg.normal((cout,), 0.05)
    var = 1.0 + jnp.abs(pg.normal((cout,), 0.05))
    scale = gamma / jnp.sqrt(var + 1e-5)          # folded inference BatchNorm
    w_folded = w * scale                          # BN scale folded into weights
    bias = beta - mean * scale
    return w_folded, bias


def linear_params(pg, cin, cout):
    w = pg.normal((cin, cout), (2.0 / cin) ** 0.5)
    b = pg.normal((cout,), 0.01)
    return w, b


def bottleneck_params(pg, cin, mid, cout, stride):
    p = {
        "conv1": conv_bn_params(pg, 1, cin, mid),
        "conv2": conv_bn_params(pg, 3, mid, mid),
        "conv3": conv_bn_params(pg, 1, mid, cout),
        "stride": stride,
    }
    if stride != 1 or cin != cout:
        p["down"] = conv_bn_params(pg, 1, cin, cout)
    return p


def make_params(seed=0):
    pg = ParamGen(seed)
    params = {"stem": conv_bn_params(pg, 7, 3, 64)}
    cfg = [(64, 256, 3, 1), (128, 512, 4, 2), (256, 1024, 6, 2), (512, 2048, 3, 2)]
    layers, cin = [], 64
    for mid, cout, nblocks, stride in cfg:
        blocks = []
        for b in range(nblocks):
            blocks.append(bottleneck_params(pg, cin, mid, cout,
                                            stride if b == 0 else 1))
            cin = cout
        layers.append(blocks)
    params["layers"] = layers
    params["fc1"] = linear_params(pg, 2048, 1024)
    params["fc2"] = linear_params(pg, 1024, 256)
    params["fc3"] = linear_params(pg, 256, 2)
    return params


# ------------------------------------------------------------------
# Forward pass (mirrors MyCustomModule.forward in eval mode)
# ------------------------------------------------------------------

def bottleneck_forward(x, p):
    s = p["stride"]
    out = conv_bn(x, *p["conv1"], stride=1, pad=0, relu=True)
    out = conv_bn(out, *p["conv2"], stride=s, pad=1, relu=True)
    idn = conv_bn(x, *p["down"], stride=s, pad=0, relu=False) if "down" in p else x
    # conv3 with residual add + final ReLU fused into its matmul epilogue
    return conv_bn(out, *p["conv3"], stride=1, pad=0, relu=True, residual=idn)


def forward(params, x_nchw):
    x = jnp.transpose(x_nchw, (0, 2, 3, 1)).astype(jnp.float32)   # NCHW -> NHWC
    x = conv_bn(x, *params["stem"], stride=2, pad=3, relu=True)   # 7x7 s2 (im2col path)
    x = maxpool_3x3_s2(x)
    for blocks in params["layers"]:
        for blk in blocks:
            x = bottleneck_forward(x, blk)
    feat = global_avgpool(x)                                      # (N, 2048) f32
    # head: Linear->ReLU->(Dropout id)->Linear->ReLU->(Dropout id)->Linear->LogSoftmax
    return mlp_head(feat, params["fc1"], params["fc2"], params["fc3"], n_cls=2)


if __name__ == "__main__":
    key = jax.random.PRNGKey(0)
    # 96x96 keeps the net small but exercises both the fused 3x3 kernel (layer1, 24x24)
    # and the im2col / fused-strided-downsample paths (layers 2-4).
    x = jax.random.normal(key, (2, 3, 96, 96), jnp.float32)
    params = make_params(seed=0)
    out = forward(params, x)
    out = jax.block_until_ready(out)
    assert out.shape == (2, 2)
    assert bool(jnp.all(jnp.isfinite(out)))
    # log-softmax rows must (log-)sum to ~1
    assert bool(jnp.allclose(jnp.sum(jnp.exp(out), axis=-1), 1.0, atol=1e-4))
    print("KERNEL_OK")
</pallas_src>

<mosaic_0001>
module attributes {stable_mosaic.version = 11 : i64} {
  func.func @_mm_kernel(%arg0: i32, %arg1: i32, %arg2: i32, %arg3: memref<256x256xbf16, #tpu.memory_space<vmem>>, %arg4: memref<256x128xbf16, #tpu.memory_space<vmem>>, %arg5: memref<1x128xf32, #tpu.memory_space<vmem>>, %arg6: memref<256x128xbf16, #tpu.memory_space<vmem>>, %arg7: memref<256x128xf32, #tpu.memory_space<vmem>>) attributes {dimension_semantics = [#tpu.dimension_semantics<parallel>, #tpu.dimension_semantics<parallel>, #tpu.dimension_semantics<arbitrary>], iteration_bounds = array<i64: 18, 1, 1>, scalar_prefetch = 0 : i64, scratch_operands = 1 : i64, tpu.core_type = #tpu.core_type<tc>, window_params = [{transform_indices = @transform_0, window_bounds = array<i64: 256, 256>}, {transform_indices = @transform_1, window_bounds = array<i64: 256, 128>}, {transform_indices = @transform_2, window_bounds = array<i64: 1, 128>}, {transform_indices = @transform_3, window_bounds = array<i64: 256, 128>}]} {
    %c0_i32 = arith.constant 0 : i32
    %0 = arith.cmpi eq, %arg2, %c0_i32 : i32
    %1 = arith.extui %0 : i1 to i32
    %c0_i32_0 = arith.constant 0 : i32
    %2 = arith.cmpi ne, %1, %c0_i32_0 : i32
    scf.if %2 {
      %cst_10 = arith.constant 0.000000e+00 : f32
      %12 = vector.broadcast %cst_10 : f32 to vector<256x128xf32>
      %c0_11 = arith.constant 0 : index
      %c0_12 = arith.constant 0 : index
      %13 = vector.load %arg7[%c0_11, %c0_12] : memref<256x128xf32, #tpu.memory_space<vmem>>, vector<256x128xf32>
      tpu.vector_store %arg7[%c0_11, %c0_12], %12 {strides = array<i32>} : memref<256x128xf32, #tpu.memory_space<vmem>>, vector<256x128xf32>,
    } else {
    }
    %c0 = arith.constant 0 : index
    %c0_1 = arith.constant 0 : index
    %3 = vector.load %arg7[%c0, %c0_1] : memref<256x128xf32, #tpu.memory_space<vmem>>, vector<256x128xf32>
    %c0_2 = arith.constant 0 : index
    %c0_3 = arith.constant 0 : index
    %4 = vector.load %arg3[%c0_2, %c0_3] : memref<256x256xbf16, #tpu.memory_space<vmem>>, vector<256x256xbf16>
    %c0_4 = arith.constant 0 : index
    %c0_5 = arith.constant 0 : index
    %5 = vector.load %arg4[%c0_4, %c0_5] : memref<256x128xbf16, #tpu.memory_space<vmem>>, vector<256x128xbf16>
    %cst = arith.constant dense<0.000000e+00> : vector<256x128xf32>
    %6 = tpu.matmul %4, %5, %cst {dimension_numbers = #tpu.dot_dimension_numbers<[1], [0], [0], [1], [0, 0, 1, 1], [], []>} : vector<256x256xbf16>, vector<256x128xbf16>, vector<256x128xf32> -> vector<256x128xf32>
    %7 = arith.addf %3, %6 : vector<256x128xf32>
    %c0_6 = arith.constant 0 : index
    %c0_7 = arith.constant 0 : index
    %8 = vector.load %arg7[%c0_6, %c0_7] : memref<256x128xf32, #tpu.memory_space<vmem>>, vector<256x128xf32>
    tpu.vector_store %arg7[%c0_6, %c0_7], %7 {strides = array<i32>} : memref<256x128xf32, #tpu.memory_space<vmem>>, vector<256x128xf32>,
    %c0_i32_8 = arith.constant 0 : i32
    %9 = arith.cmpi eq, %arg2, %c0_i32_8 : i32
    %10 = arith.extui %9 : i1 to i32
    %c0_i32_9 = arith.constant 0 : i32
    %11 = arith.cmpi ne, %10, %c0_i32_9 : i32
    scf.if %11 {
      %c0_10 = arith.constant 0 : index
      %c0_11 = arith.constant 0 : index
      %12 = vector.load %arg7[%c0_10, %c0_11] : memref<256x128xf32, #tpu.memory_space<vmem>>, vector<256x128xf32>
      %c0_12 = arith.constant 0 : index
      %c0_13 = arith.constant 0 : index
      %13 = vector.load %arg5[%c0_12, %c0_13] : memref<1x128xf32, #tpu.memory_space<vmem>>, vector<1x128xf32>
      %14 = vector.broadcast %13 : vector<1x128xf32> to vector<256x128xf32>
      %15 = arith.addf %12, %14 : vector<256x128xf32>
      %cst_14 = arith.constant 0.000000e+00 : f32
      %16 = vector.broadcast %cst_14 : f32 to vector<256x128xf32>
      %17 = arith.maximumf %15, %16 : vector<256x128xf32>
      %18 = arith.truncf %17 : vector<256x128xf32> to vector<256x128xbf16>
      %c0_15 = arith.constant 0 : index
      %c0_16 = arith.constant 0 : index
      %19 = vector.load %arg6[%c0_15, %c0_16] : memref<256x128xbf16, #tpu.memory_space<vmem>>, vector<256x128xbf16>
      tpu.vector_store %arg6[%c0_15, %c0_16], %18 {strides = array<i32>} : memref<256x128xbf16, #tpu.memory_space<vmem>>, vector<256x128xbf16>,
    } else {
    }
    return
  }
  func.func @transform_0(%arg0: i32, %arg1: i32, %arg2: i32) -> (i32, i32) {
    %c0_i32 = arith.constant 0 : i32
    return %arg0, %arg2 : i32, i32
  }
  func.func @transform_1(%arg0: i32, %arg1: i32, %arg2: i32) -> (i32, i32) {
    %c0_i32 = arith.constant 0 : i32
    return %arg2, %arg1 : i32, i32
  }
  func.func @transform_2(%arg0: i32, %arg1: i32, %arg2: i32) -> (i32, i32) {
    %c0_i32 = arith.constant 0 : i32
    %c0_i32_0 = arith.constant 0 : i32
    return %c0_i32, %arg1 : i32, i32
  }
  func.func @transform_3(%arg0: i32, %arg1: i32, %arg2: i32) -> (i32, i32) {
    %c0_i32 = arith.constant 0 : i32
    return %arg0, %arg1 : i32, i32
  }
}

</mosaic_0001>

<bundles_post_ra>
// kernel: tpu_custom_call.1
= control target key start
LH: loop header
LB: loop body
LE: loop exit
PB: predicated region body
PF: predicated region fallthrough
CT: control target
= control target key end

     0   :  { %8 = vsyncpa [#allocation4], 0  ;;  %s2324_s0 = inlined_call_operand.hbm [shape: bf16[4608,256], index: 0, kind: input, shape index: {}]   ;;  %s2325_s1 = inlined_call_operand.hbm [shape: bf16[256,128], index: 1, kind: input, shape index: {}]   ;;  %s2326_s2 = inlined_call_operand.hbm [shape: f32[1,128], index: 2, kind: input, shape index: {}]   ;;  %s2327_s3 = inlined_call_operand.hbm [shape: bf16[4608,128], index: 3, kind: output, shape index: {}]  }
   0x1   :  { %10 = vsyncpa [#allocation4 + $0x1], 0 }
   0x2   :  { %11 = vsyncpa [#allocation7], 0 }
   0x3   :  { %12 = vsyncpa [#allocation5], 0 }
   0x4   :  { %14 = vsyncpa [#allocation5 + $0x1], 0  ;;  %s1989_s12 = smov 0   ;;  %s1991_s13 = smov 0  }
   0x5   :  { %s1993_s14 = smov 0   ;;  %s1995_s15 = smov 0  }
   0x6   :  { %s1997_s16 = smov 0   ;;  %s1999_s17 = smov 0  }
   0x7 LB: > { %s1273_s18 = sadd.s32 4294967295, %s1957_s17   ;;  %s1274_s19 = sadd.s32 4294967294, %s1957_s17   ;;  %s1957_s17 = sphi %s1999_s17, %s20_s17   ;;  %s1953_s16 = sphi %s1997_s16, %s2349_s16   ;;  %s1949_s15 = sphi %s1995_s15, %s2348_s15   ;;  %s1945_s14 = sphi %s1993_s14, %s2347_s14   ;;  %s1941_s13 = sphi %s1991_s13, %s2346_s13   ;;  %s1937_s12 = sphi %s1989_s12, %s2345_s12  }
   0x8   : > { %p61_p0 = scmp.ne.s32.totalorder %s1941_s13, %s1937_s12  ;;  %p2023_p1 = scmp.eq.s32.totalorder %s1273_s18, 0 }
   0x9   : > { %p2027_p2 = scmp.eq.s32.totalorder %s1273_s18, 17  ;;  %p147_p3 = scmp.eq.s32.totalorder %s1274_s19, 17 }
   0xa   : > { %s2332_s20 = scalar_select %p2023_p1, 1, 0 }
   0xb   : > { %s2333_s21 = scalar_select %p2027_p2, 1, 0 }
   0xc   : > { %p2033_p4 = por %p2023_p1, %p61_p0  ;;  %p1275_p5 = scmp.ge.s32.totalorder %s1957_s17, 1 }
   0xd   : > { %p2038_p6 = por %p147_p3, %p61_p0  ;;  %p154_p7 = scmp.lt.s32.totalorder %s1957_s17, 19 }
   0xe   : > { %s2334_s22 = scalar_select %p2033_p4, 1, 0 }
   0xf   : > { %s2335_s23 = scalar_select %p2038_p6, 1, 0 }
  0x10   : > { %p2043_p8 = pnand %p1275_p5, %p154_p7  ;;  %s1959_s25 = smov [#allocation6]  }
  0x11   : > { %s170_s26 = sshll.u32 %s1959_s25, 4  ;;  %s1960_s28 = smov [#allocation8]   ;;  %s171_s26 = int_to_ptr.vmem [resolvable:$true] %s170_s26 }
  0x12   : > { %s2336_s24 = scalar_select %p2043_p8, 1, 0 }
  0x13   : > { %p1644_p9 = pneg %p2043_p8  ;;  %s186_s29 = sshll.u32 %s1960_s28, 4  ;;  %s2055_s29 = int_to_ptr.vmem [resolvable:$true] %s186_s29 }
  0x14   : > { %s1785_s5 = scalar_lea.hbm %s2325_s1, 2048 }
  0x15   : > { %p2051_p10 = pnand %p1644_p9, %p2023_p1  ;;  %p1786_p11 = scmp.ne.s32.totalorder %s2325_s1, %s1785_s5 }
  0x16   : > { %p1792_p3 = scmp.lt.u32.totalorder %s1785_s5, %s2325_s1 }
  0x17   : > { %p1787_p12 = pneg %p2051_p10 }
  0x19   : > { %p1788_p13 = pnand %p1787_p12, %p1786_p11 }
  0x1b   : > { %p1789_p0 = pneg %p1788_p13 }
  0x1d   : > { %p1794_p5 = pnand %p1792_p3, %p1789_p0 }
  0x1f   : > { %1797 = shalt.err (!%p1794_p5)
}
  0x20   : > { %s1798_s10 = scalar_lea.vmem %s171_s26, 2048  ;;  %p1806_p1 = scmp.lt.s32.totalorder %s171_s26, %s171_s26 }
  0x21   : > { %p1799_p7 = scmp.ne.s32.totalorder %s171_s26, %s1798_s10  ;;  %p1807_p4 = scmp.lt.s32.totalorder %s1798_s10, %s1798_s10 }
  0x23   : > { %p1801_p9 = pnand %p1799_p7, %p1787_p12  ;;  %p1808_p8 = por %p1807_p4, %p1806_p1 }
  0x25   : > { %p1802_p6 = pneg %p1801_p9 }
  0x27   : > { %p1809_p2 = pnand %p1808_p8, %p1802_p6 }
  0x29   : > { %1812 = shalt.err (!%p1809_p2)
}
  0x2a   : > { %s1961_s11 = smov 64   ;;  %s1962_s18 = smov 4  }
  0x2b   : > { %1647 = dma.hbm_to_vmem [thread:$0]  (!%p2051_p10), %s2325_s1, 2048, %s171_s26, [#allocation7], %s1961_s11, %s1961_s11, %s1962_s18  }
  0x2c   : > { %s1813_s4 = scalar_lea.hbm %s2326_s2, 16 }
  0x2d   : > { %p1814_p11 = scmp.ne.s32.totalorder %s2326_s2, %s1813_s4  ;;  %p1820_p4 = scmp.lt.u32.totalorder %s1813_s4, %s2326_s2 }
  0x2f   : > { %p1816_p1 = pnand %p1814_p11, %p1787_p12 }
  0x31   : > { %p1817_p2 = pneg %p1816_p1 }
  0x33   : > { %p1822_p6 = pnand %p1820_p4, %p1817_p2 }
  0x35   : > { %1825 = shalt.err (!%p1822_p6)
}
  0x36   : > { %s1826_s26 = scalar_lea.vmem %s2055_s29, 16  ;;  %s1833_s9 = scalar_lea.vmem %s2055_s29, 32 }
  0x37   : > { %p1827_p8 = scmp.ne.s32.totalorder %s2055_s29, %s1826_s26  ;;  %p1834_p3 = scmp.lt.s32.totalorder %s2055_s29, %s2055_s29 }
  0x38   : > { %p1835_p5 = scmp.lt.s32.totalorder %s1833_s9, %s1826_s26 }
  0x39   : > { %p1829_p13 = pnand %p1827_p8, %p1787_p12 }
  0x3a   : > { %p1836_p7 = por %p1835_p5, %p1834_p3 }
  0x3b   : > { %p1830_p0 = pneg %p1829_p13 }
  0x3d   : > { %p1837_p9 = pnand %p1836_p7, %p1830_p0 }
  0x3f   : > { %1840 = shalt.err (!%p1837_p9)
}
  0x40   : > { %1650 = dma.hbm_to_vmem [thread:$0]  (!%p2051_p10), %s2326_s2, 16, %s2055_s29, [#allocation7]  }
  0x41   : > { %s39_s18 = sadd.s32 1, %s1953_s16  ;;  %s48_s19 = sadd.s32 1, %s1945_s14 }
  0x42   : > { %p41_p12 = scmp.ge.s32.totalorder %s39_s18, 18  ;;  %p55_p11 = scmp.ne.s32.totalorder %s1945_s14, %s1941_s13 }
  0x43   : > { %p56_p1 = scmp.eq.s32.totalorder %s1957_s17, 0  ;;  %p1661_p2 = scmp.lt.s32.totalorder %s1957_s17, 18 }
  0x44   : > { %s2351_s18 = smov (%p41_p12, %s39_s18), 0  ;;  %p2338_p6 = scmp.ne.s32.totalorder %s2333_s21, 0 }
  0x45   : > { %p57_p4 = por %p56_p1, %p55_p11  ;;  %s43_s25 = ssub.s32 %s1953_s16, %s2351_s18 }
  0x46   : > { %p2115_p8 = por %p2338_p6, %p55_p11  ;;  %s197_s28 = sand.u32 1, %s1945_s14  }
  0x47   : > { %p46_p13 = scmp.eq.s32.totalorder %s43_s25, 0  ;;  %s1279_s29 = sshll.u32 %s197_s28, 8 }
  0x48   : > { %s1375_s30 = sshll.u32 %s1953_s16, 12  ;;  %s201_s21 = scalar_lea.vmem [#allocation3], %s1279_s29 }
  0x49   : > { %s2124_s4 = scalar_select %p46_p13, %s1945_s14, %s48_s19  }
  0x4a   : > { %s2129_s7 = scalar_lea.hbm %s2324_s0, %s1375_s30  ;;  %s211_s8 = sshll.u32 %s201_s21, 4  ;;  %s2137_s8 = int_to_ptr.vmem [resolvable:$true] %s211_s8 }
  0x4b   : > { %p2133_p10 = pnand %p1661_p2, %p57_p4  ;;  %s2139_s9 = scalar_lea.sflag [#allocation4], %s197_s28 }
  0x4c   : > { %s1841_s10 = scalar_lea.hbm %s2129_s7, 4096  ;;  %s1846_s25 = scalar_lea.hbm %s2324_s0, 73728 }
  0x4d   : > { %p1842_p0 = scmp.ne.s32.totalorder %s2129_s7, %s1841_s10  ;;  %p1843_p3 = pneg %p2133_p10 }
  0x4e   : > { %p1847_p9 = scmp.lt.u32.totalorder %s2129_s7, %s2324_s0  ;;  %p1848_p12 = scmp.lt.u32.totalorder %s1846_s25, %s1841_s10 }
  0x4f   : > { %p1844_p5 = pnand %p1843_p3, %p1842_p0  ;;  %p1850_p1 = scmp.lt.u32.totalorder %s1841_s10, %s2129_s7 }
  0x50   : > { %p1849_p11 = por %p1848_p12, %p1847_p9 }
  0x51   : > { %p1845_p7 = pneg %p1844_p5 }
  0x52   : > { %p1851_p2 = por %p1850_p1, %p1849_p11 }
  0x54   : > { %p1852_p4 = pnand %p1851_p2, %p1845_p7 }
  0x56   : > { %1855 = shalt.err (!%p1852_p4)
}
  0x57   : > { %s1856_s28 = scalar_lea.vmem %s2137_s8, 4096  ;;  %s1963_s5 = smov [#allocation3]  }
  0x58   : > { %p1857_p6 = scmp.ne.s32.totalorder %s2137_s8, %s1856_s28  ;;  %s1861_s6 = sshll.u32 %s1963_s5, 4  ;;  %s1862_s6 = int_to_ptr.vmem [resolvable:$false] %s1861_s6 }
  0x59   : > { %s1863_s21 = scalar_lea.vmem %s1862_s6, 8192  ;;  %p1864_p5 = scmp.lt.s32.totalorder %s2137_s8, %s1862_s6 }
  0x5a   : > { %p1859_p13 = pnand %p1857_p6, %p1843_p3  ;;  %p1865_p9 = scmp.lt.s32.totalorder %s1863_s21, %s1856_s28 }
  0x5c   : > { %p1860_p0 = pneg %p1859_p13  ;;  %p1866_p12 = por %p1865_p9, %p1864_p5 }
  0x5e   : > { %p1867_p11 = pnand %p1866_p12, %p1860_p0 }
  0x60   : > { %1870 = shalt.err (!%p1867_p11)
}
  0x61   : > { %s1964_s10 = smov 128   ;;  %s1965_s11 = smov 8  }
  0x62   : > { %1654 = dma.hbm_to_vmem [thread:$0]  (!%p2133_p10), %s2129_s7, 4096, %s2137_s8, %s2139_s9, %s1964_s10, %s1964_s10, %s1965_s11  }
  0x63   : > { %p2341_p3 = scmp.ne.s32.totalorder %s2336_s24, 0 }
  0x64   : > { %s2170_s19 = sand.u32 (!%p2341_p3), 1, %s1941_s13   ;;  %p2342_p7 = scmp.ne.s32.totalorder (!%p2341_p3), %s2334_s22, 0 }
  0x65   : > { %223 = sbr.rel (%p2341_p3) target bundleno = 440 (0x1b8), region = 32  ;;  %s1284_s25 = sshll.u32 (!%p2341_p3), %s2170_s19, 8 }
  0x66   : > { %s226_s29 = scalar_lea.sflag (!%p2341_p3), [#allocation4], %s2170_s19  ;;  %s2174_s30 = scalar_lea.vmem (!%p2341_p3), [#allocation3], %s1284_s25 }
  0x6c   : > { %1924 = dma.done.wait (%p2342_p7), %s226_s29, 4096  }
  0x6d   : > { %1926 = vsyncadd (%p2342_p7), %s226_s29, 4294963200  ;;  %p2343_p10 = scmp.ne.s32.totalorder %s2332_s20, 0 }
  0x6f   : > { %1928 = dma.done.wait (%p2343_p10), [#allocation7], 2064  }
  0x70   : > { %1930 = vsyncadd (%p2343_p10), [#allocation7], 4294965232  ;;  %v1721_v0 = vld [vmem:[#allocation6 + $0x40] sm:$0xff]   ;;  %v1723_v2 = vld [vmem:[#allocation6 + $0x48] sm:$0xff]   ;;  %s1287_s20 = sshll.u32 %s2170_s19, 7  ;;  %s1408_s24 = sshll.u32 %s1949_s15, 11 }
  0x71   : > { %v1722_v1 = vld [vmem:[#allocation6] sm:$0xff]   ;;  %1504 = vmatprep.subr.bf16.mxu0 %v1721_v0  ;;  %1616 = vmatprep.subr.bf16.mxu1 %v1721_v0  ;;  %v1724_v3 = vld [vmem:[#allocation6 + $0x8] sm:$0xff]   ;;  %v1725_v4 = vld [vmem:[#allocation6 + $0x50] sm:$0xff]   ;;  %s2223_s22 = scalar_lea.vmem [#allocation9], %s1287_s20  ;;  %s2272_s9 = scalar_lea.hbm %s2327_s3, %s1408_s24 }
  0x72   : > { %1505 = vmatpush3.bf16.msra.mxu0 %v1722_v1  ;;  %1624 = vmatpush3.bf16.msra.mxu1 %v1722_v1  ;;  %v1726_v5 = vld [vmem:[#allocation6 + $0x10] sm:$0xff]   ;;  %v1727_v6 = vld [vmem:[#allocation6 + $0x58] sm:$0xff]   ;;  %v1729_v8 = vld [vmem:[#allocation6 + $0x60] sm:$0xff]   ;;  %s1159_s7 = sshll.u32 %s2223_s22, 4  ;;  %s1145_s15 = scalar_lea.sflag [#allocation5], %s2170_s19  ;;  %s2274_s7 = int_to_ptr.vmem [resolvable:$true] %s1159_s7 }
  0x73   : > { %1506 = vmatprep.subr.bf16.mxu0 %v1723_v2  ;;  %1617 = vmatprep.subr.bf16.mxu1 %v1723_v2  ;;  %v1728_v7 = vld [vmem:[#allocation6 + $0x18] sm:$0xff]   ;;  %v1730_v9 = vld [vmem:[#allocation6 + $0x20] sm:$0xff]   ;;  %v1731_v10 = vld [vmem:[#allocation6 + $0x68] sm:$0xff]   ;;  %s1871_s28 = scalar_lea.vmem %s2274_s7, 2048  ;;  %s1966_s5 = smov [#allocation9]  }
  0x74   : > { %v1739_v11 = vld [vmem:[%s2174_s30 + $0x4] ss:$8 sps:$4 sm:$0xff]   ;;  %v1733_v14 = vld [vmem:[#allocation6 + $0x70] sm:$0xff]   ;;  %v1735_v16 = vld [vmem:[#allocation6 + $0x78] sm:$0xff]   ;;  %p1872_p1 = scmp.ne.s32.totalorder %s2274_s7, %s1871_s28  ;;  %s1875_s6 = sshll.u32 %s1966_s5, 4  ;;  %s1876_s6 = int_to_ptr.vmem [resolvable:$false] %s1875_s6 }
  0x75   : > { %v1742_v12 = vld [vmem:[%s2174_s30 + $0x84] ss:$8 sps:$4 sm:$0xff]   ;;  %685 = vmatprep.mubr.bf16.mxu0 %v1739_v11  ;;  %v1734_v15 = vld [vmem:[#allocation6 + $0x30] sm:$0xff]   ;;  %v1736_v17 = vld [vmem:[#allocation6 + $0x38] sm:$0xff]   ;;  %s1877_s21 = scalar_lea.vmem %s1876_s6, 4096  ;;  %p1878_p6 = scmp.lt.s32.totalorder %s2274_s7, %s1876_s6 }
  0x76   : > { %1507 = vmatpush3.bf16.msra.mxu0 %v1724_v3  ;;  %1625 = vmatpush3.bf16.msra.mxu1 %v1724_v3  ;;  %v1732_v13 = vld [vmem:[#allocation6 + $0x28] sm:$0xff]   ;;  %v1743_v20 = vld [vmem:[%s2174_s30 + $0x14] ss:$8 sps:$4 sm:$0xff]   ;;  %v1747_v22 = vld [vmem:[%s2174_s30 + $0x10] ss:$8 sps:$4 sm:$0xff]   ;;  %p1873_p2 = pnand %p1872_p1, %p2115_p8  ;;  %p1879_p13 = scmp.lt.s32.totalorder %s1877_s21, %s1871_s28 }
  0x77   : > { %1508 = vmatprep.subr.bf16.mxu0 %v1725_v4  ;;  %1618 = vmatprep.subr.bf16.mxu1 %v1725_v4  ;;  %v1737_v18 = vld [vmem:[%s2174_s30] ss:$8 sps:$4 sm:$0xff]   ;;  %v1745_v21 = vld [vmem:[%s2174_s30 + $0x94] ss:$8 sps:$4 sm:$0xff]   ;;  %v1748_v23 = vld [vmem:[%s2174_s30 + $0x90] ss:$8 sps:$4 sm:$0xff]  }
  0x78   : > { %749 = vmatprep.mubr.bf16.mxu1 %v1742_v12  ;;  %v1740_v19 = vld [vmem:[%s2174_s30 + $0x80] ss:$8 sps:$4 sm:$0xff]   ;;  %v1749_v24 = vld [vmem:[%s2174_s30 + $0x24] ss:$8 sps:$4 sm:$0xff]   ;;  %v1755_v28 = vld [vmem:[%s2174_s30 + $0x34] ss:$8 sps:$4 sm:$0xff]   ;;  %p1874_p4 = pneg %p1873_p2  ;;  %p1880_p0 = por %p1879_p13, %p1878_p6 }
  0x79   : > { %v1751_v25 = vld [vmem:[%s2174_s30 + $0xa4] ss:$8 sps:$4 sm:$0xff]   ;;  %v1753_v26 = vld [vmem:[%s2174_s30 + $0x20] ss:$8 sps:$4 sm:$0xff]   ;;  %v1757_v29 = vld [vmem:[%s2174_s30 + $0xb4] ss:$8 sps:$4 sm:$0xff]  }
  0x7a   : > { %1509 = vmatpush3.bf16.msra.mxu0 %v1726_v5  ;;  %1626 = vmatpush3.bf16.msra.mxu1 %v1726_v5  ;;  %v1754_v27 = vld [vmem:[%s2174_s30 + $0xa0] ss:$8 sps:$4 sm:$0xff]   ;;  %v1759_v30 = vld [vmem:[%s2174_s30 + $0x30] ss:$8 sps:$4 sm:$0xff]   ;;  %v1761_v32 = vld [vmem:[%s2174_s30 + $0x44] ss:$8 sps:$4 sm:$0xff]   ;;  %p1881_p5 = pnand %p1880_p0, %p1874_p4 }
  0x7b   : > { %1510 = vmatprep.subr.bf16.mxu0 %v1727_v6  ;;  %1619 = vmatprep.subr.bf16.mxu1 %v1727_v6  ;;  %v1760_v31 = vld [vmem:[%s2174_s30 + $0xb0] ss:$8 sps:$4 sm:$0xff]   ;;  %v1763_v33 = vld [vmem:[%s2174_s30 + $0xc4] ss:$8 sps:$4 sm:$0xff]   ;;  %v1765_v34 = vld [vmem:[%s2174_s30 + $0x40] ss:$8 sps:$4 sm:$0xff]  }
  0x7c   : > { %v1766_v35 = vld [vmem:[%s2174_s30 + $0xc0] ss:$8 sps:$4 sm:$0xff]   ;;  %v1767_v36 = vld [vmem:[%s2174_s30 + $0x54] ss:$8 sps:$4 sm:$0xff]   ;;  %v1771_v38 = vld [vmem:[%s2174_s30 + $0x50] ss:$8 sps:$4 sm:$0xff]  }
  0x7d   : > { %v1769_v37 = vld [vmem:[%s2174_s30 + $0xd4] ss:$8 sps:$4 sm:$0xff]   ;;  %v1772_v39 = vld [vmem:[%s2174_s30 + $0xd0] ss:$8 sps:$4 sm:$0xff]   ;;  %v1773_v40 = vld [vmem:[%s2174_s30 + $0x64] ss:$8 sps:$4 sm:$0xff]  }
  0x7e   : > { %1511 = vmatpush3.bf16.msra.mxu0 %v1728_v7  ;;  %1627 = vmatpush3.bf16.msra.mxu1 %v1728_v7  ;;  %v1775_v41 = vld [vmem:[%s2174_s30 + $0xe4] ss:$8 sps:$4 sm:$0xff]   ;;  %v1777_v42 = vld [vmem:[%s2174_s30 + $0x60] ss:$8 sps:$4 sm:$0xff]   ;;  %v1779_v44 = vld [vmem:[%s2174_s30 + $0x74] ss:$8 sps:$4 sm:$0xff]  }
  0x7f   : > { %1512 = vmatprep.subr.bf16.mxu0 %v1729_v8  ;;  %1620 = vmatprep.subr.bf16.mxu1 %v1729_v8  ;;  %v1778_v43 = vld [vmem:[%s2174_s30 + $0xe0] ss:$8 sps:$4 sm:$0xff]   ;;  %v1781_v45 = vld [vmem:[%s2174_s30 + $0xf4] ss:$8 sps:$4 sm:$0xff]   ;;  %v1783_v46 = vld [vmem:[%s2174_s30 + $0x70] ss:$8 sps:$4 sm:$0xff]  }
  0x80   : > { %v1784_v47 = vld [vmem:[%s2174_s30 + $0xf0] ss:$8 sps:$4 sm:$0xff]   ;;  %v2216_v51 = vld [vmem:[#allocation8] ss:$0 sm:$0xff] }
  0x82   : > { %1513 = vmatpush3.bf16.msra.mxu0 %v1730_v9  ;;  %1628 = vmatpush3.bf16.msra.mxu1 %v1730_v9 }
  0x83   : > { %1514 = vmatprep.subr.bf16.mxu0 %v1731_v10  ;;  %1621 = vmatprep.subr.bf16.mxu1 %v1731_v10 }
  0x86   : > { %1515 = vmatpush3.bf16.msra.mxu0 %v1732_v13  ;;  %1629 = vmatpush3.bf16.msra.mxu1 %v1732_v13 }
  0x87   : > { %1516 = vmatprep.subr.bf16.mxu0 %v1733_v14  ;;  %1622 = vmatprep.subr.bf16.mxu1 %v1733_v14 }
  0x8a   : > { %1517 = vmatpush3.bf16.msra.mxu0 %v1734_v15  ;;  %1630 = vmatpush3.bf16.msra.mxu1 %v1734_v15 }
  0x8b   : > { %1518 = vmatprep.subr.bf16.mxu0 %v1735_v16  ;;  %1623 = vmatprep.subr.bf16.mxu1 %v1735_v16 }
  0x8e   : > { %1519 = vmatpush3.bf16.msra.mxu0 %v1736_v17  ;;  %1631 = vmatpush3.bf16.msra.mxu1 %v1736_v17 }
  0x91   : > { %686 = vmatmul.mubr.bf16.vlgmr.msra.gmra.mrb[0].mxu0 %v1737_v18  ;;  %750 = vmatmul.mubr.bf16.vlgmr.msra.gmra.mrb[0].mxu1 %v1740_v19 }
  0x92   : > { %693 = vmatprep.mubr.bf16.mxu0 %v1743_v20  ;;  %757 = vmatprep.mubr.bf16.mxu1 %v1745_v21 }
  0x99   : > { %694 = vmatmul.mubr.bf16.gmra.mrb[4].mxu0 %v1747_v22  ;;  %758 = vmatmul.mubr.bf16.gmra.mrb[4].mxu1 %v1748_v23 }
  0x9a   : > { %701 = vmatprep.mubr.bf16.mxu0 %v1749_v24  ;;  %765 = vmatprep.mubr.bf16.mxu1 %v1751_v25 }
  0xa1   : > { %702 = vmatmul.mubr.bf16.gmra.mrb[8].mxu0 %v1753_v26  ;;  %766 = vmatmul.mubr.bf16.gmra.mrb[8].mxu1 %v1754_v27 }
  0xa2   : > { %709 = vmatprep.mubr.bf16.mxu0 %v1755_v28  ;;  %773 = vmatprep.mubr.bf16.mxu1 %v1757_v29 }
  0xa9   : > { %710 = vmatmul.mubr.bf16.gmra.mrb[12].mxu0 %v1759_v30  ;;  %774 = vmatmul.mubr.bf16.gmra.mrb[12].mxu1 %v1760_v31 }
  0xaa   : > { %717 = vmatprep.mubr.bf16.mxu0 %v1761_v32  ;;  %781 = vmatprep.mubr.bf16.mxu1 %v1763_v33 }
  0xb1   : > { %718 = vmatmul.mubr.bf16.gmra.mrb[16].mxu0 %v1765_v34  ;;  %782 = vmatmul.mubr.bf16.gmra.mrb[16].mxu1 %v1766_v35 }
  0xb2   : > { %725 = vmatprep.mubr.bf16.mxu0 %v1767_v36  ;;  %789 = vmatprep.mubr.bf16.mxu1 %v1769_v37 }
  0xb9   : > { %726 = vmatmul.mubr.bf16.gmra.mrb[20].mxu0 %v1771_v38  ;;  %790 = vmatmul.mubr.bf16.gmra.mrb[20].mxu1 %v1772_v39 }
  0xba   : > { %733 = vmatprep.mubr.bf16.mxu0 %v1773_v40  ;;  %797 = vmatprep.mubr.bf16.mxu1 %v1775_v41 }
  0xc1   : > { %734 = vmatmul.mubr.bf16.gmra.mrb[24].mxu0 %v1777_v42  ;;  %798 = vmatmul.mubr.bf16.gmra.mrb[24].mxu1 %v1778_v43 }
  0xc2   : > { %741 = vmatprep.mubr.bf16.mxu0 %v1779_v44  ;;  %805 = vmatprep.mubr.bf16.mxu1 %v1781_v45 }
  0xc9   : > { %742 = vmatmul.mubr.bf16.gmra.mrb[28].mxu0 %v1783_v46  ;;  %806 = vmatmul.mubr.bf16.gmra.mrb[28].mxu1 %v1784_v47 }
 0x164   : > { %v1520_v48 = vpop.f32.mrb[0].mxu0  ;;  %v1568_v49 = vpop.f32.mrb[0].mxu1 }
 0x165   : > { %v1521_v50 = vpop.f32.mrb[1].mxu0  ;;  %v1569_v52 = vpop.f32.mrb[1].mxu1 }
 0x166   : > { %v1522_v53 = vadd.f32 %v1521_v50, %v1520_v48  ;;  %v1570_v54 = vadd.f32 %v1569_v52, %v1568_v49  ;;  %v1523_v55 = vpop.f32.mrb[2].mxu0  ;;  %v1571_v56 = vpop.f32.mrb[2].mxu1 }
 0x167   : > { %v1524_v57 = vpop.f32.mrb[3].mxu0  ;;  %v1572_v58 = vpop.f32.mrb[3].mxu1 }
 0x168   : > { %v920_v59 = vadd.f32 %v1522_v53, %v2216_v51  ;;  %v936_v60 = vadd.f32 %v1570_v54, %v2216_v51  ;;  %v1525_v61 = vadd.f32 %v1524_v57, %v1523_v55  ;;  %v1573_v62 = vadd.f32 %v1572_v58, %v1571_v56 }
 0x16a   : > { %v921_v63 = vadd.f32 %v1525_v61, %v2216_v51  ;;  %v937_v0 = vadd.f32 %v1573_v62, %v2216_v51  ;;  %v952_v1 = vmax.f32 %v920_v59, 0.0  ;;  %v968_v2 = vmax.f32 %v936_v60, 0.0 }
 0x16c   : > { %v953_v3 = vmax.f32 %v921_v63, 0.0  ;;  %v969_v4 = vmax.f32 %v937_v0, 0.0  ;;  %v1526_v5 = vpop.f32.mrb[4].mxu0  ;;  %v1574_v6 = vpop.f32.mrb[4].mxu1 }
 0x16d   : > { %v1527_v7 = vpop.f32.mrb[5].mxu0  ;;  %v1575_v8 = vpop.f32.mrb[5].mxu1 }
 0x16e   : > { %v1412_v9 = vpack.c.bf16 %v953_v3, %v952_v1  ;;  %v1452_v10 = vpack.c.bf16 %v969_v4, %v968_v2  ;;  %v1528_v11 = vadd.f32 %v1527_v7, %v1526_v5  ;;  %v1576_v12 = vadd.f32 %v1575_v8, %v1574_v6  ;;  %v1529_v13 = vpop.f32.mrb[6].mxu0  ;;  %v1577_v14 = vpop.f32.mrb[6].mxu1 }
 0x16f   : > { %v1530_v15 = vpop.f32.mrb[7].mxu0  ;;  %v1578_v16 = vpop.f32.mrb[7].mxu1 }
 0x170   : > { %1413 = vst [vmem:[%s2223_s22] sm:$0xff] %v1412_v9   ;;  %1496 = vst [vmem:[%s2223_s22 + $0x40] sm:$0xff] %v1452_v10   ;;  %v922_v17 = vadd.f32 %v1528_v11, %v2216_v51  ;;  %v938_v18 = vadd.f32 %v1576_v12, %v2216_v51  ;;  %v1531_v19 = vadd.f32 %v1530_v15, %v1529_v13 }
 0x171   : > { %v1579_v20 = vadd.f32 %v1578_v16, %v1577_v14 }
 0x172   : > { %v923_v21 = vadd.f32 %v1531_v19, %v2216_v51  ;;  %v954_v23 = vmax.f32 %v922_v17, 0.0  ;;  %v970_v24 = vmax.f32 %v938_v18, 0.0 }
 0x173   : > { %v939_v22 = vadd.f32 %v1579_v20, %v2216_v51 }
 0x174   : > { %v955_v25 = vmax.f32 %v923_v21, 0.0  ;;  %v1532_v27 = vpop.f32.mrb[8].mxu0  ;;  %v1580_v28 = vpop.f32.mrb[8].mxu1 }
 0x175   : > { %v971_v26 = vmax.f32 %v939_v22, 0.0  ;;  %v1533_v29 = vpop.f32.mrb[9].mxu0  ;;  %v1581_v30 = vpop.f32.mrb[9].mxu1 }
 0x176   : > { %v1417_v31 = vpack.c.bf16 %v955_v25, %v954_v23  ;;  %v1534_v33 = vadd.f32 %v1533_v29, %v1532_v27  ;;  %v1582_v34 = vadd.f32 %v1581_v30, %v1580_v28  ;;  %v1535_v35 = vpop.f32.mrb[10].mxu0  ;;  %v1583_v36 = vpop.f32.mrb[10].mxu1 }
 0x177   : > { %v1457_v32 = vpack.c.bf16 %v971_v26, %v970_v24  ;;  %v1536_v37 = vpop.f32.mrb[11].mxu0  ;;  %v1584_v38 = vpop.f32.mrb[11].mxu1 }
 0x178   : > { %1489 = vst [vmem:[%s2223_s22 + $0x8] sm:$0xff] %v1417_v31   ;;  %v924_v39 = vadd.f32 %v1534_v33, %v2216_v51  ;;  %v940_v40 = vadd.f32 %v1582_v34, %v2216_v51  ;;  %v1537_v41 = vadd.f32 %v1536_v37, %v1535_v35  ;;  %v1585_v42 = vadd.f32 %v1584_v38, %v1583_v36 }
 0x179   : > { %1497 = vst [vmem:[%s2223_s22 + $0x48] sm:$0xff] %v1457_v32  }
 0x17a   : > { %v925_v43 = vadd.f32 %v1537_v41, %v2216_v51  ;;  %v941_v44 = vadd.f32 %v1585_v42, %v2216_v51  ;;  %v956_v45 = vmax.f32 %v924_v39, 0.0  ;;  %v972_v46 = vmax.f32 %v940_v40, 0.0 }
 0x17c   : > { %v957_v47 = vmax.f32 %v925_v43, 0.0  ;;  %v973_v48 = vmax.f32 %v941_v44, 0.0  ;;  %v1538_v49 = vpop.f32.mrb[12].mxu0  ;;  %v1586_v50 = vpop.f32.mrb[12].mxu1 }
 0x17d   : > { %v1539_v52 = vpop.f32.mrb[13].mxu0  ;;  %v1587_v53 = vpop.f32.mrb[13].mxu1 }
 0x17e   : > { %v1422_v54 = vpack.c.bf16 %v957_v47, %v956_v45  ;;  %v1462_v55 = vpack.c.bf16 %v973_v48, %v972_v46  ;;  %v1540_v56 = vadd.f32 %v1539_v52, %v1538_v49  ;;  %v1588_v57 = vadd.f32 %v1587_v53, %v1586_v50  ;;  %v1541_v58 = vpop.f32.mrb[14].mxu0  ;;  %v1589_v59 = vpop.f32.mrb[14].mxu1 }
 0x17f   : > { %v1542_v60 = vpop.f32.mrb[15].mxu0  ;;  %v1590_v61 = vpop.f32.mrb[15].mxu1 }
 0x180   : > { %1490 = vst [vmem:[%s2223_s22 + $0x10] sm:$0xff] %v1422_v54   ;;  %1498 = vst [vmem:[%s2223_s22 + $0x50] sm:$0xff] %v1462_v55   ;;  %v926_v62 = vadd.f32 %v1540_v56, %v2216_v51  ;;  %v942_v63 = vadd.f32 %v1588_v57, %v2216_v51  ;;  %v1543_v0 = vadd.f32 %v1542_v60, %v1541_v58 }
 0x181   : > { %v1591_v1 = vadd.f32 %v1590_v61, %v1589_v59 }
 0x182   : > { %v927_v2 = vadd.f32 %v1543_v0, %v2216_v51  ;;  %v958_v4 = vmax.f32 %v926_v62, 0.0  ;;  %v974_v5 = vmax.f32 %v942_v63, 0.0 }
 0x183   : > { %v943_v3 = vadd.f32 %v1591_v1, %v2216_v51 }
 0x184   : > { %v959_v6 = vmax.f32 %v927_v2, 0.0  ;;  %v1544_v8 = vpop.f32.mrb[16].mxu0  ;;  %v1592_v9 = vpop.f32.mrb[16].mxu1 }
 0x185   : > { %v975_v7 = vmax.f32 %v943_v3, 0.0  ;;  %v1545_v10 = vpop.f32.mrb[17].mxu0  ;;  %v1593_v11 = vpop.f32.mrb[17].mxu1 }
 0x186   : > { %v1427_v12 = vpack.c.bf16 %v959_v6, %v958_v4  ;;  %v1546_v14 = vadd.f32 %v1545_v10, %v1544_v8  ;;  %v1594_v15 = vadd.f32 %v1593_v11, %v1592_v9  ;;  %v1547_v16 = vpop.f32.mrb[18].mxu0  ;;  %v1595_v17 = vpop.f32.mrb[18].mxu1 }
 0x187   : > { %v1467_v13 = vpack.c.bf16 %v975_v7, %v974_v5  ;;  %v1548_v18 = vpop.f32.mrb[19].mxu0  ;;  %v1596_v19 = vpop.f32.mrb[19].mxu1 }
 0x188   : > { %1491 = vst [vmem:[%s2223_s22 + $0x18] sm:$0xff] %v1427_v12   ;;  %v928_v20 = vadd.f32 %v1546_v14, %v2216_v51  ;;  %v944_v21 = vadd.f32 %v1594_v15, %v2216_v51  ;;  %v1549_v22 = vadd.f32 %v1548_v18, %v1547_v16  ;;  %v1597_v23 = vadd.f32 %v1596_v19, %v1595_v17 }
 0x189   : > { %1499 = vst [vmem:[%s2223_s22 + $0x58] sm:$0xff] %v1467_v13  }
 0x18a   : > { %v929_v24 = vadd.f32 %v1549_v22, %v2216_v51  ;;  %v945_v25 = vadd.f32 %v1597_v23, %v2216_v51  ;;  %v960_v26 = vmax.f32 %v928_v20, 0.0  ;;  %v976_v27 = vmax.f32 %v944_v21, 0.0 }
 0x18c   : > { %v961_v28 = vmax.f32 %v929_v24, 0.0  ;;  %v977_v29 = vmax.f32 %v945_v25, 0.0  ;;  %v1550_v30 = vpop.f32.mrb[20].mxu0  ;;  %v1598_v31 = vpop.f32.mrb[20].mxu1 }
 0x18d   : > { %v1551_v32 = vpop.f32.mrb[21].mxu0  ;;  %v1599_v33 = vpop.f32.mrb[21].mxu1 }
 0x18e   : > { %v1432_v34 = vpack.c.bf16 %v961_v28, %v960_v26  ;;  %v1472_v35 = vpack.c.bf16 %v977_v29, %v976_v27  ;;  %v1552_v36 = vadd.f32 %v1551_v32, %v1550_v30  ;;  %v1600_v37 = vadd.f32 %v1599_v33, %v1598_v31  ;;  %v1553_v38 = vpop.f32.mrb[22].mxu0  ;;  %v1601_v39 = vpop.f32.mrb[22].mxu1 }
 0x18f   : > { %v1554_v40 = vpop.f32.mrb[23].mxu0  ;;  %v1602_v41 = vpop.f32.mrb[23].mxu1 }
 0x190   : > { %1492 = vst [vmem:[%s2223_s22 + $0x20] sm:$0xff] %v1432_v34   ;;  %1500 = vst [vmem:[%s2223_s22 + $0x60] sm:$0xff] %v1472_v35   ;;  %v930_v42 = vadd.f32 %v1552_v36, %v2216_v51  ;;  %v946_v43 = vadd.f32 %v1600_v37, %v2216_v51  ;;  %v1555_v44 = vadd.f32 %v1554_v40, %v1553_v38 }
 0x191   : > { %v1603_v45 = vadd.f32 %v1602_v41, %v1601_v39 }
 0x192   : > { %v931_v46 = vadd.f32 %v1555_v44, %v2216_v51  ;;  %v962_v48 = vmax.f32 %v930_v42, 0.0  ;;  %v978_v49 = vmax.f32 %v946_v43, 0.0 }
 0x193   : > { %v947_v47 = vadd.f32 %v1603_v45, %v2216_v51 }
 0x194   : > { %v963_v50 = vmax.f32 %v931_v46, 0.0  ;;  %v1556_v53 = vpop.f32.mrb[24].mxu0  ;;  %v1604_v54 = vpop.f32.mrb[24].mxu1 }
 0x195   : > { %v979_v52 = vmax.f32 %v947_v47, 0.0  ;;  %v1557_v55 = vpop.f32.mrb[25].mxu0  ;;  %v1605_v56 = vpop.f32.mrb[25].mxu1 }
 0x196   : > { %v1437_v57 = vpack.c.bf16 %v963_v50, %v962_v48  ;;  %v1558_v59 = vadd.f32 %v1557_v55, %v1556_v53  ;;  %v1606_v60 = vadd.f32 %v1605_v56, %v1604_v54  ;;  %v1559_v61 = vpop.f32.mrb[26].mxu0  ;;  %v1607_v62 = vpop.f32.mrb[26].mxu1 }
 0x197   : > { %v1477_v58 = vpack.c.bf16 %v979_v52, %v978_v49  ;;  %v1560_v63 = vpop.f32.mrb[27].mxu0  ;;  %v1608_v0 = vpop.f32.mrb[27].mxu1 }
 0x198   : > { %1493 = vst [vmem:[%s2223_s22 + $0x28] sm:$0xff] %v1437_v57   ;;  %v932_v1 = vadd.f32 %v1558_v59, %v2216_v51  ;;  %v948_v2 = vadd.f32 %v1606_v60, %v2216_v51  ;;  %v1561_v3 = vadd.f32 %v1560_v63, %v1559_v61  ;;  %v1609_v4 = vadd.f32 %v1608_v0, %v1607_v62 }
 0x199   : > { %1501 = vst [vmem:[%s2223_s22 + $0x68] sm:$0xff] %v1477_v58  }
 0x19a   : > { %v933_v5 = vadd.f32 %v1561_v3, %v2216_v51  ;;  %v949_v6 = vadd.f32 %v1609_v4, %v2216_v51  ;;  %v964_v7 = vmax.f32 %v932_v1, 0.0  ;;  %v980_v8 = vmax.f32 %v948_v2, 0.0 }
 0x19c   : > { %v965_v9 = vmax.f32 %v933_v5, 0.0  ;;  %v981_v10 = vmax.f32 %v949_v6, 0.0  ;;  %v1562_v11 = vpop.f32.mrb[28].mxu0  ;;  %v1610_v12 = vpop.f32.mrb[28].mxu1 }
 0x19d   : > { %v1563_v13 = vpop.f32.mrb[29].mxu0  ;;  %v1611_v14 = vpop.f32.mrb[29].mxu1 }
 0x19e   : > { %v1442_v15 = vpack.c.bf16 %v965_v9, %v964_v7  ;;  %v1482_v16 = vpack.c.bf16 %v981_v10, %v980_v8  ;;  %v1564_v17 = vadd.f32 %v1563_v13, %v1562_v11  ;;  %v1612_v18 = vadd.f32 %v1611_v14, %v1610_v12  ;;  %v1565_v19 = vpop.f32.mrb[30].mxu0  ;;  %v1613_v20 = vpop.f32.mrb[30].mxu1 }
 0x19f   : > { %v1566_v21 = vpop.f32.mrb[31].mxu0  ;;  %v1614_v22 = vpop.f32.mrb[31].mxu1 }
 0x1a0   : > { %1494 = vst [vmem:[%s2223_s22 + $0x30] sm:$0xff] %v1442_v15   ;;  %1502 = vst [vmem:[%s2223_s22 + $0x70] sm:$0xff] %v1482_v16   ;;  %v934_v23 = vadd.f32 %v1564_v17, %v2216_v51  ;;  %v950_v24 = vadd.f32 %v1612_v18, %v2216_v51  ;;  %v1567_v25 = vadd.f32 %v1566_v21, %v1565_v19 }
 0x1a1   : > { %v1615_v26 = vadd.f32 %v1614_v22, %v1613_v20 }
 0x1a2   : > { %v935_v27 = vadd.f32 %v1567_v25, %v2216_v51  ;;  %v966_v29 = vmax.f32 %v934_v23, 0.0  ;;  %v982_v30 = vmax.f32 %v950_v24, 0.0 }
 0x1a3   : > { %v951_v28 = vadd.f32 %v1615_v26, %v2216_v51 }
 0x1a4   : > { %v967_v31 = vmax.f32 %v935_v27, 0.0 }
 0x1a5   : > { %v983_v32 = vmax.f32 %v951_v28, 0.0 }
 0x1a6   : > { %v1447_v33 = vpack.c.bf16 %v967_v31, %v966_v29 }
 0x1a7   : > { %v1487_v34 = vpack.c.bf16 %v983_v32, %v982_v30 }
 0x1a8   : > { %1495 = vst [vmem:[%s2223_s22 + $0x38] sm:$0xff] %v1447_v33  }
 0x1a9   : > { %1503 = vst [vmem:[%s2223_s22 + $0x78] sm:$0xff] %v1487_v34  }
 0x1aa   : > { %1884 = shalt.err (!%p1881_p5)
}
 0x1ab   : > { %s1885_s10 = scalar_lea.hbm %s2272_s9, 2048  ;;  %s1889_s29 = scalar_lea.hbm %s2327_s3, 36864 }
 0x1ac   : > { %p1886_p9 = scmp.ne.s32.totalorder %s2272_s9, %s1885_s10  ;;  %p1890_p3 = scmp.lt.u32.totalorder %s2272_s9, %s2327_s3 }
 0x1ad   : > { %p1891_p7 = scmp.lt.u32.totalorder %s1889_s29, %s1885_s10  ;;  %p1893_p1 = scmp.lt.u32.totalorder %s1885_s10, %s2272_s9 }
 0x1ae   : > { %p1887_p12 = pnand %p1886_p9, %p2115_p8 }
 0x1af   : > { %p1892_p10 = por %p1891_p7, %p1890_p3 }
 0x1b0   : > { %p1888_p11 = pneg %p1887_p12 }
 0x1b1   : > { %p1894_p2 = por %p1893_p1, %p1892_p10 }
 0x1b3   : > { %p1895_p4 = pnand %p1894_p2, %p1888_p11 }
 0x1b5   : > { %1898 = shalt.err (!%p1895_p4)
}
 0x1b6   : > { %s1967_s22 = smov 64   ;;  %s1968_s24 = smov 4  }
 0x1b7   : > { %1642 = dma.vmem_to_hbm [thread:$0]  (%p2115_p8), %s2274_s7, 2048, %s2272_s9, %s1145_s15, %s1967_s22, %s1967_s22, %s1968_s24  }
 0x1b8 PF: > { %p1664_p6 = scmp.ge.s32.totalorder %s1957_s17, 2  ;;  %s1174_s8 = sand.u32 1, %s1937_s12  }
 0x1b9   : > { %p2344_p13 = scmp.ne.s32.totalorder %s2335_s23, 0  ;;  %s1175_s26 = scalar_lea.sflag [#allocation5], %s1174_s8 }
 0x1bb   : > { %p1656_p0 = pnand %p1664_p6, %p2344_p13 }
 0x1bd   : > { %1932 = dma.done.wait (!%p1656_p0), %s1175_s26, 2048  }
 0x1be   : > { %1934 = vsyncadd (!%p1656_p0), %s1175_s26, 4294965248  ;;  %s20_s17 = sadd.s32 1, %s1957_s17   ;;  %s2345_s12 = smov %s1941_s13 }
 0x1bf   : > { %p17_p5 = scmp.ge.s32.totalorder %s20_s17, 20   ;;  %s2346_s13 = smov %s1945_s14 }
 0x1c0   : > { %s2347_s14 = smov %s2124_s4  ;;  %s2348_s15 = smov %s1953_s16 }
 0x1c1   : > { %s2349_s16 = smov %s2351_s18  ;;  %19 = sbr.rel (!%p17_p5) target bundleno = 7 (0x7), region = 95 }
 0x1c8   :  { %1180 = vsyncpa [#allocation4], 1 }
 0x1c9   :  { %1182 = vsyncpa [#allocation4 + $0x1], 1 }
 0x1ca   :  { %1183 = vsyncpa [#allocation7], 1 }
 0x1cb   :  { %1184 = vsyncpa [#allocation5], 1 }
 0x1cc   :  { %1186 = vsyncpa [#allocation5 + $0x1], 1 }

</bundles_post_ra>
